<compile_context>
chip_gen: v7x
topology: tpu7x:2x2x1
jax: 0.10.0
libtpu: 0.0.40
codegen_flags: <defaults>
</compile_context>

<pallas_src>
import functools

import jax
import jax.numpy as jnp
from jax.experimental import pallas as pl
from jax.experimental.pallas import tpu as pltpu

_LANE = 128
_TM = 256                                   # fixed M tile: MXU-canonical, no recompile churn
_TK_CAP = 1024                              # max K tile
_TN_CAP = 512                               # max N tile
_WEIGHT_RESIDENT_BYTES = 4 * 1024 * 1024    # keep bf16 weight VMEM-resident below this


def _round_up(x: int, m: int) -> int:
    return ((x + m - 1) // m) * m


def _pick_tile(dim_p: int, cap: int, prefer_multi_tile: bool = False) -> int:
    """Largest 128-multiple divisor of dim_p that is <= cap (dim_p % 128 == 0)."""
    cands = [c for c in range(_LANE, min(cap, dim_p) + 1, _LANE) if dim_p % c == 0]
    if not cands:
        return dim_p
    if prefer_multi_tile:
        multi = [c for c in cands if dim_p // c >= 2]
        if multi:                 # helps v7x: >=2 parallel tiles -> both TCs busy
            return max(multi)
    return max(cands)


def _linear_kernel(x_ref, w_ref, o_ref, *scratch, w_resident, tk, tn):
    # x_ref : (tm, tk) activation tile (f32 or bf16; cast to bf16 here)
    # w_ref : (tk, tn) streamed weight tile   OR   (Kp, Np) VMEM-resident weight
    # o_ref : (tm, tn) output tile
    # scratch: () when K fits one tile, else ((tm, tn) f32 accumulator,)
    if w_resident:
        if tk == w_ref.shape[0] and tn == w_ref.shape[1]:
            w_tile = w_ref[...]                       # whole weight is one panel
        else:
            j = pl.program_id(1)
            k = pl.program_id(2)
            w_tile = w_ref[
                pl.ds(pl.multiple_of(k * tk, _LANE), tk),
                pl.ds(pl.multiple_of(j * tn, _LANE), tn),
            ]
    else:
        w_tile = w_ref[...]

    part = jnp.dot(
        x_ref[...].astype(jnp.bfloat16), w_tile, preferred_element_type=jnp.float32
    )

    if not scratch:
        # Single K step: write straight through, no accumulator.
        o_ref[...] = part.astype(o_ref.dtype)
    else:
        (acc_ref,) = scratch
        k = pl.program_id(2)

        @pl.when(k == 0)
        def _():
            acc_ref[...] = jnp.zeros_like(acc_ref)

        acc_ref[...] += part

        @pl.when(k == pl.num_programs(2) - 1)
        def _():
            o_ref[...] = acc_ref[...].astype(o_ref.dtype)


def pallas_linear_padded(x_p, w_p, *, tm, tn, tk, w_resident,
                         out_dtype=jnp.float32):
    """x_p: (Mp, Kp) f32/bf16, w_p: (Kp, Np) bf16; Mp%tm==0, Kp%tk==0, Np%tn==0."""
    Mp, Kp = x_p.shape
    Kp2, Np = w_p.shape
    assert Kp == Kp2
    assert Mp % tm == 0 and Np % tn == 0 and Kp % tk == 0

    gm, gn, gk = Mp // tm, Np // tn, Kp // tk
    single_k = gk == 1

    kernel = functools.partial(_linear_kernel, w_resident=w_resident, tk=tk, tn=tn)

    if w_resident:
        # Full-array block, constant index_map -> DMA'd into VMEM once, reused
        # by every grid step (no per-M-tile re-streaming of the weight).
        w_spec = pl.BlockSpec((Kp, Np), lambda i, j, k: (0, 0))
        w_stream_factor = 1
    else:
        w_spec = pl.BlockSpec((tk, tn), lambda i, j, k: (k, j))
        w_stream_factor = gm

    scratch = [] if single_k else [pltpu.VMEM((tm, tn), jnp.float32)]

    flops = 2 * Mp * Np * Kp
    bytes_accessed = (
        x_p.size * x_p.dtype.itemsize
        + w_p.size * w_p.dtype.itemsize * w_stream_factor
        + Mp * Np * jnp.dtype(out_dtype).itemsize
    )

    return pl.pallas_call(
        kernel,
        out_shape=jax.ShapeDtypeStruct((Mp, Np), out_dtype),
        grid_spec=pltpu.PrefetchScalarGridSpec(
            num_scalar_prefetch=0,
            grid=(gm, gn, gk),
            in_specs=[
                pl.BlockSpec((tm, tk), lambda i, j, k: (i, k)),
                w_spec,
            ],
            out_specs=pl.BlockSpec((tm, tn), lambda i, j, k: (i, j)),
            scratch_shapes=scratch,
        ),
        compiler_params=pltpu.CompilerParams(
            dimension_semantics=("parallel", "parallel", "arbitrary"),
            vmem_limit_bytes=32 * 1024 * 1024,
        ),
        cost_estimate=pl.CostEstimate(
            flops=flops, transcendentals=0, bytes_accessed=bytes_accessed
        ),
    )(x_p, w_p)


class PallasEncoderLinear:
    """JAX/Pallas equivalent of PyTorchEncoderLinear."""

    def __init__(self, in_features: int, out_features: int, bias: bool = False,
                 content_key: str = "content", *, key: jax.Array):
        self._content_key = content_key
        self.in_features = in_features
        self.out_features = out_features

        k_w, k_b = jax.random.split(key)
        bound = 1.0 / (in_features ** 0.5)
        # Master weight in torch.nn.Linear layout (out, in), f32, U(-b, b) init.
        self.weight = jax.random.uniform(
            k_w, (out_features, in_features), jnp.float32, -bound, bound
        )
        self.bias = (
            jax.random.uniform(k_b, (out_features,), jnp.float32, -bound, bound)
            if bias else None
        )
        # TODO(synk): bias (when enabled) is added in the wrapper, not fused
        # into the Pallas kernel epilogue.

        # Kernel-side weight prepared ONCE: (K, N) layout, padded only to the
        # 128-lane layout minimum, cast to bf16 for the MXU.
        Kp = _round_up(in_features, _LANE)
        Np = _round_up(out_features, _LANE)
        self._Kp, self._Np = Kp, Np
        self._w_kn = jnp.pad(
            self.weight.T.astype(jnp.bfloat16),
            ((0, Kp - in_features), (0, Np - out_features)),
        )

        self._tm = _TM
        self._tk = _pick_tile(Kp, _TK_CAP)
        self._tn = _pick_tile(Np, _TN_CAP, prefer_multi_tile=True)
        w_bytes = self._w_kn.size * self._w_kn.dtype.itemsize
        self._w_resident = w_bytes <= _WEIGHT_RESIDENT_BYTES

    @property
    def content_key(self) -> str:
        return self._content_key

    def __call__(self, inputs):
        x = inputs[self._content_key]                 # (..., in_features)
        lead = x.shape[:-1]
        K = x.shape[-1]
        assert K == self.in_features
        x2d = x.reshape((-1, K))
        M = x2d.shape[0]

        Mp = _round_up(max(M, 1), self._tm)           # M bucketed to fixed tm
        Kp = self._Kp

        if Mp == M and Kp == K:
            x_in = x2d                                # no pad; kernel casts per-tile
        else:
            # Single pad op; cast to bf16 here so the padded HBM copy is half-size.
            x_in = jnp.pad(x2d.astype(jnp.bfloat16), ((0, Mp - M), (0, Kp - K)))

        y_p = pallas_linear_padded(
            x_in, self._w_kn,
            tm=self._tm, tn=self._tn, tk=self._tk,
            w_resident=self._w_resident,
            out_dtype=jnp.float32,
        )
        y2d = y_p[:M, :self.out_features]
        if self.bias is not None:
            y2d = y2d + self.bias
        return {"content": y2d.reshape(lead + (self.out_features,))}


if __name__ == "__main__":
    key = jax.random.PRNGKey(0)
    k_w, k_x = jax.random.split(key)

    batch, seq, in_features, out_features = 2, 8, 32, 64
    module = PallasEncoderLinear(in_features, out_features, bias=False, key=k_w)

    x = jax.random.normal(k_x, (batch, seq, in_features), jnp.float32)
    out = module({"content": x})
    y = jax.block_until_ready(out["content"])

    # Reference with the same bf16-input / f32-accumulation numerics.
    ref = jnp.dot(
        x.reshape(-1, in_features).astype(jnp.bfloat16),
        module.weight.T.astype(jnp.bfloat16),
        preferred_element_type=jnp.float32,
    ).reshape(batch, seq, out_features)

    assert y.shape == (batch, seq, out_features)
    assert jnp.allclose(y, ref, atol=1e-2, rtol=1e-2), float(
        jnp.max(jnp.abs(y - ref))
    )
    print("KERNEL_OK")
</pallas_src>

<mosaic_0001>
module attributes {stable_mosaic.version = 11 : i64} {
  func.func @_linear_kernel(%arg0: i32, %arg1: i32, %arg2: i32, %arg3: memref<256x128xbf16, #tpu.memory_space<vmem>>, %arg4: memref<128x128xbf16, #tpu.memory_space<vmem>>, %arg5: memref<256x128xf32, #tpu.memory_space<vmem>>) attributes {dimension_semantics = [#tpu.dimension_semantics<parallel>, #tpu.dimension_semantics<parallel>, #tpu.dimension_semantics<arbitrary>], iteration_bounds = array<i64: 1, 1, 1>, scalar_prefetch = 0 : i64, scratch_operands = 0 : i64, tpu.core_type = #tpu.core_type<tc>, window_params = [{transform_indices = @transform_0, window_bounds = array<i64: 256, 128>}, {pipeline_mode = #tpu.pipeline_mode<synchronous>, transform_indices = @transform_1, window_bounds = array<i64: 128, 128>}, {transform_indices = @transform_2, window_bounds = array<i64: 256, 128>}]} {
    %c0 = arith.constant 0 : index
    %c0_0 = arith.constant 0 : index
    %0 = vector.load %arg4[%c0, %c0_0] : memref<128x128xbf16, #tpu.memory_space<vmem>>, vector<128x128xbf16>
    %c0_1 = arith.constant 0 : index
    %c0_2 = arith.constant 0 : index
    %1 = vector.load %arg3[%c0_1, %c0_2] : memref<256x128xbf16, #tpu.memory_space<vmem>>, vector<256x128xbf16>
    %cst = arith.constant dense<0.000000e+00> : vector<256x128xf32>
    %2 = tpu.matmul %1, %0, %cst {dimension_numbers = #tpu.dot_dimension_numbers<[1], [0], [0], [1], [0, 0, 1, 1], [], []>} : vector<256x128xbf16>, vector<128x128xbf16>, vector<256x128xf32> -> vector<256x128xf32>
    %c0_3 = arith.constant 0 : index
    %c0_4 = arith.constant 0 : index
    %3 = vector.load %arg5[%c0_3, %c0_4] : memref<256x128xf32, #tpu.memory_space<vmem>>, vector<256x128xf32>
    tpu.vector_store %arg5[%c0_3, %c0_4], %2 {strides = array<i32>} : memref<256x128xf32, #tpu.memory_space<vmem>>, vector<256x128xf32>,
    return
  }
  func.func @transform_0(%arg0: i32, %arg1: i32, %arg2: i32) -> (i32, i32) {
    %c0_i32 = arith.constant 0 : i32
    return %arg0, %arg2 : i32, i32
  }
  func.func @transform_1(%arg0: i32, %arg1: i32, %arg2: i32) -> (i32, i32) {
    %c0_i32 = arith.constant 0 : i32
    %c0_i32_0 = arith.constant 0 : i32
    %c0_i32_1 = arith.constant 0 : i32
    return %c0_i32, %c0_i32_0 : i32, i32
  }
  func.func @transform_2(%arg0: i32, %arg1: i32, %arg2: i32) -> (i32, i32) {
    %c0_i32 = arith.constant 0 : i32
    return %arg0, %arg1 : i32, i32
  }
}

</mosaic_0001>

<bundles_post_ra>
// kernel: tpu_custom_call.1
= control target key start
LH: loop header
LB: loop body
LE: loop exit
PB: predicated region body
PF: predicated region fallthrough
CT: control target
= control target key end

     0   :  { %7 = vsyncpa [#allocation3], 0  ;;  %s717_s0 = inlined_call_operand.hbm [shape: bf16[256,128], index: 0, kind: input, shape index: {}]   ;;  %s718_s1 = inlined_call_operand.hbm [shape: bf16[128,128], index: 1, kind: input, shape index: {}]   ;;  %s719_s2 = inlined_call_operand.hbm [shape: f32[256,128], index: 2, kind: output, shape index: {}]  }
   0x1   :  { %8 = vsyncpa [#allocation6], 0 }
   0x2   :  { %9 = vsyncpa [#allocation4], 0  ;;  %s659_s9 = smov [#allocation2]   ;;  %s587_s13 = scalar_lea.hbm %s717_s0, 2048 }
   0x3   :  { %s15_s10 = sshll.u32 %s659_s9, 4  ;;  %p588_p0 = scmp.ne.s32.totalorder %s717_s0, %s587_s13  ;;  %s16_s10 = int_to_ptr.vmem [resolvable:$true] %s15_s10 }
   0x4   :  { %p591_p1 = scmp.lt.u32.totalorder %s587_s13, %s717_s0 }
   0x6   :  { %p593_p2 = pnand %p591_p1, %p588_p0 }
   0x8   :  { %596 = shalt.err (!%p593_p2)
}
   0x9   :  { %s597_s18 = scalar_lea.vmem %s16_s10, 2048  ;;  %p602_p4 = scmp.lt.s32.totalorder %s16_s10, %s16_s10 }
   0xa   :  { %p598_p3 = scmp.ne.s32.totalorder %s16_s10, %s597_s18  ;;  %p603_p5 = scmp.lt.s32.totalorder %s597_s18, %s597_s18 }
   0xc   :  { %p604_p6 = por %p603_p5, %p602_p4 }
   0xe   :  { %p605_p7 = pnand %p604_p6, %p598_p3 }
  0x10   :  { %608 = shalt.err (!%p605_p7)
}
  0x11   :  { %s660_s19 = smov 64   ;;  %s661_s20 = smov 4  }
  0x12   :  { %21 = dma.hbm_to_vmem [thread:$0]  %s717_s0, 2048, %s16_s10, [#allocation3], %s660_s19, %s660_s19, %s661_s20  }
  0x13   :  { %s662_s23 = smov [#allocation5]   ;;  %s609_s27 = scalar_lea.hbm %s718_s1, 1024 }
  0x14   :  { %s27_s24 = sshll.u32 %s662_s23, 4  ;;  %p610_p8 = scmp.ne.s32.totalorder %s718_s1, %s609_s27  ;;  %s28_s24 = int_to_ptr.vmem [resolvable:$true] %s27_s24 }
  0x15   :  { %p613_p9 = scmp.lt.u32.totalorder %s609_s27, %s718_s1 }
  0x17   :  { %p615_p10 = pnand %p613_p9, %p610_p8 }
  0x19   :  { %618 = shalt.err (!%p615_p10)
}
  0x1a   :  { %s619_s4 = scalar_lea.vmem %s28_s24, 1024  ;;  %p624_p12 = scmp.lt.s32.totalorder %s28_s24, %s28_s24 }
  0x1b   :  { %p620_p11 = scmp.ne.s32.totalorder %s28_s24, %s619_s4  ;;  %p625_p13 = scmp.lt.s32.totalorder %s619_s4, %s619_s4 }
  0x1d   :  { %p626_p0 = por %p625_p13, %p624_p12 }
  0x1f   :  { %p627_p1 = pnand %p626_p0, %p620_p11 }
  0x21   :  { %630 = shalt.err (!%p627_p1)
}
  0x22   :  { %33 = dma.hbm_to_vmem [thread:$0]  %s718_s1, 1024, %s28_s24, [#allocation6], %s660_s19, %s660_s19, %s661_s20  }
  0x23   :  { %653 = dma.done.wait [#allocation3], 2048  }
  0x24   :  { %654 = vsyncadd [#allocation3], 4294965248 }
  0x25   :  { %655 = dma.done.wait [#allocation6], 1024  }
  0x26   :  { %656 = vsyncadd [#allocation6], 4294966272  ;;  %v563_v0 = vld [vmem:[#allocation5] sm:$0xff]   ;;  %v564_v1 = vld [vmem:[#allocation5 + $0x8] sm:$0xff]   ;;  %s663_s1 = smov [#allocation7]  }
  0x27   :  { %492 = vmatprep.subr.bf16.mxu0 %v563_v0  ;;  %540 = vmatprep.subr.bf16.mxu1 %v563_v0  ;;  %v565_v2 = vld [vmem:[#allocation5 + $0x10] sm:$0xff]   ;;  %v566_v3 = vld [vmem:[#allocation5 + $0x18] sm:$0xff]   ;;  %v571_v4 = vld [vmem:[#allocation2] sm:$0xff]   ;;  %s431_s6 = sshll.u32 %s663_s1, 4  ;;  %s432_s6 = int_to_ptr.vmem [resolvable:$true] %s431_s6 }
  0x28   :  { %493 = vmatpush3.bf16.msra.mxu0 %v563_v0  ;;  %548 = vmatpush3.bf16.msra.mxu1 %v563_v0  ;;  %v572_v5 = vld [vmem:[#allocation2 + $0x40] sm:$0xff]   ;;  %v568_v7 = vld [vmem:[#allocation5 + $0x28] sm:$0xff]   ;;  %v569_v8 = vld [vmem:[#allocation5 + $0x30] sm:$0xff]   ;;  %s631_s7 = scalar_lea.vmem %s432_s6, 4096  ;;  %p636_p3 = scmp.lt.s32.totalorder %s432_s6, %s432_s6 }
  0x29   :  { %494 = vmatprep.subr.bf16.mxu0 %v564_v1  ;;  %541 = vmatprep.subr.bf16.mxu1 %v564_v1  ;;  %v567_v6 = vld [vmem:[#allocation5 + $0x20] sm:$0xff]   ;;  %v570_v9 = vld [vmem:[#allocation5 + $0x38] sm:$0xff]   ;;  %v573_v10 = vld [vmem:[#allocation2 + $0x8] sm:$0xff]   ;;  %p632_p2 = scmp.ne.s32.totalorder %s432_s6, %s631_s7  ;;  %p637_p4 = scmp.lt.s32.totalorder %s631_s7, %s631_s7 }
  0x2a   :  { %508 = vmatprep.mubr.bf16.mxu0 %v571_v4  ;;  %524 = vmatprep.mubr.bf16.mxu1 %v572_v5  ;;  %v574_v11 = vld [vmem:[#allocation2 + $0x48] sm:$0xff]   ;;  %v575_v12 = vld [vmem:[#allocation2 + $0x10] sm:$0xff]   ;;  %v577_v14 = vld [vmem:[#allocation2 + $0x18] sm:$0xff]  }
  0x2b   :  { %v576_v13 = vld [vmem:[#allocation2 + $0x50] sm:$0xff]   ;;  %v578_v15 = vld [vmem:[#allocation2 + $0x58] sm:$0xff]   ;;  %v579_v16 = vld [vmem:[#allocation2 + $0x20] sm:$0xff]   ;;  %p638_p5 = por %p637_p4, %p636_p3 }
  0x2c   :  { %495 = vmatpush3.bf16.msra.mxu0 %v564_v1  ;;  %549 = vmatpush3.bf16.msra.mxu1 %v564_v1  ;;  %v580_v17 = vld [vmem:[#allocation2 + $0x60] sm:$0xff]   ;;  %v581_v18 = vld [vmem:[#allocation2 + $0x28] sm:$0xff]   ;;  %v583_v20 = vld [vmem:[#allocation2 + $0x30] sm:$0xff]  }
  0x2d   :  { %496 = vmatprep.subr.bf16.mxu0 %v565_v2  ;;  %542 = vmatprep.subr.bf16.mxu1 %v565_v2  ;;  %v582_v19 = vld [vmem:[#allocation2 + $0x68] sm:$0xff]   ;;  %v584_v21 = vld [vmem:[#allocation2 + $0x70] sm:$0xff]   ;;  %v585_v22 = vld [vmem:[#allocation2 + $0x38] sm:$0xff]   ;;  %p639_p6 = pnand %p638_p5, %p632_p2 }
  0x2e   :  { %v586_v23 = vld [vmem:[#allocation2 + $0x78] sm:$0xff]  }
  0x30   :  { %497 = vmatpush3.bf16.msra.mxu0 %v565_v2  ;;  %550 = vmatpush3.bf16.msra.mxu1 %v565_v2 }
  0x31   :  { %498 = vmatprep.subr.bf16.mxu0 %v566_v3  ;;  %543 = vmatprep.subr.bf16.mxu1 %v566_v3 }
  0x34   :  { %499 = vmatpush3.bf16.msra.mxu0 %v566_v3  ;;  %551 = vmatpush3.bf16.msra.mxu1 %v566_v3 }
  0x35   :  { %500 = vmatprep.subr.bf16.mxu0 %v567_v6  ;;  %544 = vmatprep.subr.bf16.mxu1 %v567_v6 }
  0x38   :  { %501 = vmatpush3.bf16.msra.mxu0 %v567_v6  ;;  %552 = vmatpush3.bf16.msra.mxu1 %v567_v6 }
  0x39   :  { %502 = vmatprep.subr.bf16.mxu0 %v568_v7  ;;  %545 = vmatprep.subr.bf16.mxu1 %v568_v7 }
  0x3c   :  { %503 = vmatpush3.bf16.msra.mxu0 %v568_v7  ;;  %553 = vmatpush3.bf16.msra.mxu1 %v568_v7 }
  0x3d   :  { %504 = vmatprep.subr.bf16.mxu0 %v569_v8  ;;  %546 = vmatprep.subr.bf16.mxu1 %v569_v8 }
  0x40   :  { %505 = vmatpush3.bf16.msra.mxu0 %v569_v8  ;;  %554 = vmatpush3.bf16.msra.mxu1 %v569_v8 }
  0x41   :  { %506 = vmatprep.subr.bf16.mxu0 %v570_v9  ;;  %547 = vmatprep.subr.bf16.mxu1 %v570_v9 }
  0x44   :  { %507 = vmatpush3.bf16.msra.mxu0 %v570_v9  ;;  %555 = vmatpush3.bf16.msra.mxu1 %v570_v9 }
  0x47   :  { %509 = vmatmul.mubr.bf16.vlgmr.msra.gmra.mrb[0].mxu0 %v573_v10  ;;  %525 = vmatmul.mubr.bf16.vlgmr.msra.gmra.mrb[0].mxu1 %v574_v11 }
  0x48   :  { %512 = vmatprep.mubr.bf16.mxu0 %v575_v12  ;;  %528 = vmatprep.mubr.bf16.mxu1 %v576_v13 }
  0x4f   :  { %513 = vmatmul.mubr.bf16.gmra.mrb[4].mxu0 %v577_v14  ;;  %529 = vmatmul.mubr.bf16.gmra.mrb[4].mxu1 %v578_v15 }
  0x50   :  { %516 = vmatprep.mubr.bf16.mxu0 %v579_v16  ;;  %532 = vmatprep.mubr.bf16.mxu1 %v580_v17 }
  0x57   :  { %517 = vmatmul.mubr.bf16.gmra.mrb[8].mxu0 %v581_v18  ;;  %533 = vmatmul.mubr.bf16.gmra.mrb[8].mxu1 %v582_v19 }
  0x58   :  { %520 = vmatprep.mubr.bf16.mxu0 %v583_v20  ;;  %536 = vmatprep.mubr.bf16.mxu1 %v584_v21 }
  0x5f   :  { %521 = vmatmul.mubr.bf16.gmra.mrb[12].mxu0 %v585_v22  ;;  %537 = vmatmul.mubr.bf16.gmra.mrb[12].mxu1 %v586_v23 }
 0x11a   :  { %v510_v24 = vpop.f32.mrb[0].mxu0  ;;  %v526_v25 = vpop.f32.mrb[0].mxu1 }
 0x11b   :  { %396 = vst [vmem:[#allocation7 + $0x10] sm:$0xff] %v510_v24  ;;  %412 = vst [vmem:[#allocation7 + $0x90] sm:$0xff] %v526_v25  ;;  %v267_v26 = vpop.f32.mrb[1].mxu0  ;;  %v331_v27 = vpop.f32.mrb[1].mxu1 }
 0x11c   :  { %394 = vst [vmem:[#allocation7] sm:$0xff] %v267_v26  ;;  %410 = vst [vmem:[#allocation7 + $0x80] sm:$0xff] %v331_v27  ;;  %v511_v28 = vpop.f32.mrb[2].mxu0  ;;  %v527_v29 = vpop.f32.mrb[2].mxu1 }
 0x11d   :  { %397 = vst [vmem:[#allocation7 + $0x18] sm:$0xff] %v511_v28  ;;  %413 = vst [vmem:[#allocation7 + $0x98] sm:$0xff] %v527_v29  ;;  %v270_v30 = vpop.f32.mrb[3].mxu0  ;;  %v334_v31 = vpop.f32.mrb[3].mxu1 }
 0x11e   :  { %395 = vst [vmem:[#allocation7 + $0x8] sm:$0xff] %v270_v30  ;;  %411 = vst [vmem:[#allocation7 + $0x88] sm:$0xff] %v334_v31 }
 0x122   :  { %v514_v32 = vpop.f32.mrb[4].mxu0  ;;  %v530_v33 = vpop.f32.mrb[4].mxu1 }
 0x123   :  { %400 = vst [vmem:[#allocation7 + $0x30] sm:$0xff] %v514_v32  ;;  %416 = vst [vmem:[#allocation7 + $0xb0] sm:$0xff] %v530_v33  ;;  %v283_v34 = vpop.f32.mrb[5].mxu0  ;;  %v347_v35 = vpop.f32.mrb[5].mxu1 }
 0x124   :  { %398 = vst [vmem:[#allocation7 + $0x20] sm:$0xff] %v283_v34  ;;  %414 = vst [vmem:[#allocation7 + $0xa0] sm:$0xff] %v347_v35  ;;  %v515_v36 = vpop.f32.mrb[6].mxu0  ;;  %v531_v37 = vpop.f32.mrb[6].mxu1 }
 0x125   :  { %401 = vst [vmem:[#allocation7 + $0x38] sm:$0xff] %v515_v36  ;;  %417 = vst [vmem:[#allocation7 + $0xb8] sm:$0xff] %v531_v37  ;;  %v286_v38 = vpop.f32.mrb[7].mxu0  ;;  %v350_v39 = vpop.f32.mrb[7].mxu1 }
 0x126   :  { %399 = vst [vmem:[#allocation7 + $0x28] sm:$0xff] %v286_v38  ;;  %415 = vst [vmem:[#allocation7 + $0xa8] sm:$0xff] %v350_v39 }
 0x12a   :  { %v518_v40 = vpop.f32.mrb[8].mxu0  ;;  %v534_v41 = vpop.f32.mrb[8].mxu1 }
 0x12b   :  { %404 = vst [vmem:[#allocation7 + $0x50] sm:$0xff] %v518_v40  ;;  %420 = vst [vmem:[#allocation7 + $0xd0] sm:$0xff] %v534_v41  ;;  %v299_v42 = vpop.f32.mrb[9].mxu0  ;;  %v363_v43 = vpop.f32.mrb[9].mxu1 }
 0x12c   :  { %402 = vst [vmem:[#allocation7 + $0x40] sm:$0xff] %v299_v42  ;;  %418 = vst [vmem:[#allocation7 + $0xc0] sm:$0xff] %v363_v43  ;;  %v519_v44 = vpop.f32.mrb[10].mxu0  ;;  %v535_v45 = vpop.f32.mrb[10].mxu1 }
 0x12d   :  { %405 = vst [vmem:[#allocation7 + $0x58] sm:$0xff] %v519_v44  ;;  %421 = vst [vmem:[#allocation7 + $0xd8] sm:$0xff] %v535_v45  ;;  %v302_v46 = vpop.f32.mrb[11].mxu0  ;;  %v366_v47 = vpop.f32.mrb[11].mxu1 }
 0x12e   :  { %403 = vst [vmem:[#allocation7 + $0x48] sm:$0xff] %v302_v46  ;;  %419 = vst [vmem:[#allocation7 + $0xc8] sm:$0xff] %v366_v47 }
 0x132   :  { %v522_v48 = vpop.f32.mrb[12].mxu0  ;;  %v538_v49 = vpop.f32.mrb[12].mxu1 }
 0x133   :  { %408 = vst [vmem:[#allocation7 + $0x70] sm:$0xff] %v522_v48  ;;  %424 = vst [vmem:[#allocation7 + $0xf0] sm:$0xff] %v538_v49  ;;  %v315_v50 = vpop.f32.mrb[13].mxu0  ;;  %v379_v51 = vpop.f32.mrb[13].mxu1 }
 0x134   :  { %406 = vst [vmem:[#allocation7 + $0x60] sm:$0xff] %v315_v50  ;;  %422 = vst [vmem:[#allocation7 + $0xe0] sm:$0xff] %v379_v51  ;;  %v523_v52 = vpop.f32.mrb[14].mxu0  ;;  %v539_v53 = vpop.f32.mrb[14].mxu1 }
 0x135   :  { %409 = vst [vmem:[#allocation7 + $0x78] sm:$0xff] %v523_v52  ;;  %425 = vst [vmem:[#allocation7 + $0xf8] sm:$0xff] %v539_v53  ;;  %v318_v54 = vpop.f32.mrb[15].mxu0  ;;  %v382_v55 = vpop.f32.mrb[15].mxu1 }
 0x136   :  { %407 = vst [vmem:[#allocation7 + $0x68] sm:$0xff] %v318_v54  ;;  %423 = vst [vmem:[#allocation7 + $0xe8] sm:$0xff] %v382_v55 }
 0x137   :  { %642 = shalt.err (!%p639_p6)
}
 0x138   :  { %s643_s10 = scalar_lea.hbm %s719_s2, 4096 }
 0x139   :  { %p644_p7 = scmp.ne.s32.totalorder %s719_s2, %s643_s10  ;;  %p647_p8 = scmp.lt.u32.totalorder %s643_s10, %s719_s2 }
 0x13b   :  { %p649_p9 = pnand %p647_p8, %p644_p7 }
 0x13d   :  { %652 = shalt.err (!%p649_p9)
}
 0x13e   :  { %s664_s15 = smov 128   ;;  %s665_s16 = smov 8  }
 0x13f   :  { %437 = dma.vmem_to_hbm [thread:$0]  %s432_s6, 4096, %s719_s2, [#allocation4], %s664_s15, %s664_s15, %s665_s16  }
 0x140   :  { %657 = dma.done.wait [#allocation4], 4096  }
 0x141   :  { %658 = vsyncadd [#allocation4], 4294963200 }
 0x142   :  { %441 = vsyncpa [#allocation3], 1 }
 0x143   :  { %442 = vsyncpa [#allocation6], 1 }
 0x144   :  { %443 = vsyncpa [#allocation4], 1 }

</bundles_post_ra>
